<compile_context>
chip_gen: v7x
topology: tpu7x:2x2x1
jax: 0.10.0
libtpu: 0.0.40
codegen_flags: <defaults>
</compile_context>

<pallas_src>
import math
import functools

import jax
import jax.numpy as jnp
from jax import lax
from jax.experimental import pallas as pl
from jax.experimental.pallas import tpu as pltpu


MXU_DTYPE = jnp.bfloat16          # matmul operand dtype (f32 accumulate)
ACT_DTYPE = jnp.bfloat16          # activation / weight storage dtype
LN_EPS = 1e-5                     # PyTorch LayerNorm default
NEG_INF = -1e30                   # finite "minus infinity" for additive masks
VMEM_LIMIT = 48 * 1024 * 1024     # safe on v7x (64 MiB physical); v5e/v6e can go higher

# tile targets (shrink automatically to the full dim for small arrays);
# on v5e/v6e (128 MiB VMEM) TN/TK can be bumped toward 1024.
TM_TARGET, TN_TARGET, TK_TARGET = 256, 512, 512


def _pick_tile(dim, target, align):
    """Largest tile <= target that divides dim and is `align`-aligned; else full dim."""
    if dim <= target:
        return dim
    t = (min(target, dim) // align) * align
    while t >= align:
        if dim % t == 0:
            return t
        t -= align
    return dim


# ----------------------------- dense kernels --------------------------------

def _dense_kernel(x_ref, w_ref, b_ref, o_ref, acc_ref, *, activation):
    """Tiled y = x @ w + b (optional ReLU). K is the last (arbitrary) grid axis."""
    @pl.when(pl.program_id(2) == 0)
    def _init():
        acc_ref[...] = jnp.zeros_like(acc_ref)

    acc_ref[...] += jnp.dot(x_ref[...].astype(MXU_DTYPE),
                            w_ref[...].astype(MXU_DTYPE),
                            preferred_element_type=jnp.float32)

    @pl.when(pl.program_id(2) == pl.num_programs(2) - 1)
    def _finalize():
        y = acc_ref[...] + b_ref[...].astype(jnp.float32)
        if activation == "relu":
            y = jnp.maximum(y, 0.0)
        o_ref[...] = y.astype(o_ref.dtype)


def dense(x, w, b, activation=None, out_dtype=ACT_DTYPE):
    """y = x @ w + b (optionally ReLU).  x: (M, K) bf16, w: (K, N) bf16, b: (N,) f32."""
    M, K = x.shape
    N = w.shape[1]
    tm = _pick_tile(M, TM_TARGET, 8)
    tn = _pick_tile(N, TN_TARGET, 128)
    tk = _pick_tile(K, TK_TARGET, 128)
    grid = (M // tm, N // tn, K // tk)
    return pl.pallas_call(
        functools.partial(_dense_kernel, activation=activation),
        out_shape=jax.ShapeDtypeStruct((M, N), out_dtype),
        grid=grid,
        in_specs=[
            pl.BlockSpec((tm, tk), lambda i, j, k: (i, k)),
            pl.BlockSpec((tk, tn), lambda i, j, k: (k, j)),
            pl.BlockSpec((1, tn), lambda i, j, k: (0, j)),
        ],
        out_specs=pl.BlockSpec((tm, tn), lambda i, j, k: (i, j)),
        scratch_shapes=[pltpu.VMEM((tm, tn), jnp.float32)],
        compiler_params=pltpu.CompilerParams(
            dimension_semantics=("parallel", "parallel", "arbitrary"),
            vmem_limit_bytes=VMEM_LIMIT,
        ),
    )(x, w, b.reshape(1, N))


def _dense_res_ln_kernel(*refs, eps, has_ln2):
    """out = LN2?(LN1(res + x @ w + b)).  N (=E) is whole per tile so the row
    reductions run in the matmul epilogue."""
    if has_ln2:
        (x_ref, w_ref, b_ref, res_ref, g_ref, beta_ref,
         g2_ref, b2_ref, o_ref, acc_ref) = refs
    else:
        (x_ref, w_ref, b_ref, res_ref, g_ref, beta_ref,
         o_ref, acc_ref) = refs
        g2_ref = b2_ref = None

    @pl.when(pl.program_id(1) == 0)
    def _init():
        acc_ref[...] = jnp.zeros_like(acc_ref)

    acc_ref[...] += jnp.dot(x_ref[...].astype(MXU_DTYPE),
                            w_ref[...].astype(MXU_DTYPE),
                            preferred_element_type=jnp.float32)

    def _ln(y, g, b):
        mu = jnp.mean(y, axis=-1, keepdims=True)
        var = jnp.mean(jnp.square(y - mu), axis=-1, keepdims=True)
        return (y - mu) * lax.rsqrt(var + eps) * g[...].astype(jnp.float32) \
            + b[...].astype(jnp.float32)

    @pl.when(pl.program_id(1) == pl.num_programs(1) - 1)
    def _finalize():
        y = acc_ref[...] + b_ref[...].astype(jnp.float32) \
            + res_ref[...].astype(jnp.float32)
        y = _ln(y, g_ref, beta_ref)
        if has_ln2:
            y = _ln(y, g2_ref, b2_ref)
        o_ref[...] = y.astype(o_ref.dtype)


def dense_residual_layernorm(x, w, b, residual, gamma, beta,
                             gamma2=None, beta2=None, eps=LN_EPS):
    """LayerNorm(residual + x @ w + b), optionally followed by a second
    LayerNorm (used to fuse the final encoder/decoder stack norm)."""
    M, K = x.shape
    N = w.shape[1]
    tm = _pick_tile(M, TM_TARGET, 8)
    tk = _pick_tile(K, TK_TARGET, 128)
    grid = (M // tm, K // tk)
    has_ln2 = gamma2 is not None

    in_specs = [
        pl.BlockSpec((tm, tk), lambda i, k: (i, k)),
        pl.BlockSpec((tk, N), lambda i, k: (k, 0)),
        pl.BlockSpec((1, N), lambda i, k: (0, 0)),
        pl.BlockSpec((tm, N), lambda i, k: (i, 0)),
        pl.BlockSpec((1, N), lambda i, k: (0, 0)),
        pl.BlockSpec((1, N), lambda i, k: (0, 0)),
    ]
    args = [x, w, b.reshape(1, N), residual,
            gamma.reshape(1, N), beta.reshape(1, N)]
    if has_ln2:
        in_specs += [pl.BlockSpec((1, N), lambda i, k: (0, 0)),
                     pl.BlockSpec((1, N), lambda i, k: (0, 0))]
        args += [gamma2.reshape(1, N), beta2.reshape(1, N)]

    return pl.pallas_call(
        functools.partial(_dense_res_ln_kernel, eps=eps, has_ln2=has_ln2),
        out_shape=jax.ShapeDtypeStruct((M, N), ACT_DTYPE),
        grid=grid,
        in_specs=in_specs,
        out_specs=pl.BlockSpec((tm, N), lambda i, k: (i, 0)),
        scratch_shapes=[pltpu.VMEM((tm, N), jnp.float32)],
        compiler_params=pltpu.CompilerParams(
            dimension_semantics=("parallel", "arbitrary"),
            vmem_limit_bytes=VMEM_LIMIT,
        ),
    )(*args)


# --------------------------- attention kernel --------------------------------

def _attention_kernel(*refs, num_heads, scale, causal, has_kpm, fused_qkv):
    """All heads of one batch element per grid step.
    Q/K/V are column ranges of a fused slab (sliced in-kernel); per-head outputs
    are stored directly into o_ref column ranges. The causal mask is built
    in-kernel; the key-padding bias (optional) is a (1, Lk) row vector."""
    idx = 0
    if fused_qkv:
        qkv_ref = refs[idx]; idx += 1
    else:
        q_ref = refs[idx]; kv_ref = refs[idx + 1]; idx += 2
    if has_kpm:
        kpm_ref = refs[idx]; idx += 1
    o_ref = refs[idx]

    if fused_qkv:
        slab = qkv_ref[0]                       # (L, 3E) bf16
        E = slab.shape[-1] // 3
        q_all = slab[:, 0:E]
        k_all = slab[:, E:2 * E]
        v_all = slab[:, 2 * E:3 * E]
    else:
        q_all = q_ref[0]                        # (Lq, E) bf16
        kv = kv_ref[0]                          # (Lk, 2E) bf16
        E = q_all.shape[-1]
        k_all = kv[:, 0:E]
        v_all = kv[:, E:2 * E]

    Lq = q_all.shape[0]
    Lk = k_all.shape[0]
    dh = E // num_heads

    bias = None
    if has_kpm:
        bias = kpm_ref[0].astype(jnp.float32)                   # (1, Lk)
    if causal:
        row = lax.broadcasted_iota(jnp.int32, (Lq, Lk), 0)
        col = lax.broadcasted_iota(jnp.int32, (Lq, Lk), 1)
        cm = jnp.where(row >= col, 0.0, NEG_INF).astype(jnp.float32)
        bias = cm if bias is None else bias + cm

    for h in range(num_heads):                  # static loop; heads are column slices
        sl = slice(h * dh, (h + 1) * dh)
        # fold the softmax scale into q (Lq x dh mul, not Lq x Lk)
        qh = (q_all[:, sl].astype(jnp.float32) * scale).astype(MXU_DTYPE)
        kh = k_all[:, sl].astype(MXU_DTYPE)
        vh = v_all[:, sl].astype(MXU_DTYPE)
        # contract dh of both operands -> no explicit transpose / XLU relayout
        s = lax.dot_general(qh, kh, (((1,), (1,)), ((), ())),
                            preferred_element_type=jnp.float32)
        if bias is not None:
            s = s + bias
        m = jnp.maximum(jnp.max(s, axis=-1, keepdims=True), NEG_INF)   # finite
        p = jnp.exp(s - m)
        denom = jnp.maximum(jnp.sum(p, axis=-1, keepdims=True), 1e-30)
        p = p * pl.reciprocal(denom, approx=True)
        oh = jnp.dot(p.astype(MXU_DTYPE), vh, preferred_element_type=jnp.float32)
        # direct per-head store: bounded live ranges, no concat
        o_ref[0, :, h * dh:(h + 1) * dh] = oh.astype(o_ref.dtype)


def attention_self(qkv, kpm, num_heads, scale, causal):
    """Self-attention. qkv: (B, L, 3E) fused slab, kpm: None | (B, 1, L) additive bias."""
    B, L, E3 = qkv.shape
    E = E3 // 3
    has_kpm = kpm is not None

    in_specs = [pl.BlockSpec((1, L, E3), lambda i: (i, 0, 0))]
    args = [qkv]
    if has_kpm:
        in_specs.append(pl.BlockSpec((1, 1, L), lambda i: (i, 0, 0)))
        args.append(kpm)

    return pl.pallas_call(
        functools.partial(_attention_kernel, num_heads=num_heads, scale=scale,
                          causal=causal, has_kpm=has_kpm, fused_qkv=True),
        out_shape=jax.ShapeDtypeStruct((B, L, E), ACT_DTYPE),
        grid=(B,),
        in_specs=in_specs,
        out_specs=pl.BlockSpec((1, L, E), lambda i: (i, 0, 0)),
        compiler_params=pltpu.CompilerParams(
            dimension_semantics=("parallel",),
            vmem_limit_bytes=VMEM_LIMIT,
        ),
    )(*args)


def attention_cross(q, kv, num_heads, scale):
    """Cross-attention. q: (B, Lq, E), kv: (B, Lk, 2E) fused slab, no mask."""
    B, Lq, E = q.shape
    Lk = kv.shape[1]
    return pl.pallas_call(
        functools.partial(_attention_kernel, num_heads=num_heads, scale=scale,
                          causal=False, has_kpm=False, fused_qkv=False),
        out_shape=jax.ShapeDtypeStruct((B, Lq, E), ACT_DTYPE),
        grid=(B,),
        in_specs=[
            pl.BlockSpec((1, Lq, E), lambda i: (i, 0, 0)),
            pl.BlockSpec((1, Lk, 2 * E), lambda i: (i, 0, 0)),
        ],
        out_specs=pl.BlockSpec((1, Lq, E), lambda i: (i, 0, 0)),
        compiler_params=pltpu.CompilerParams(
            dimension_semantics=("parallel",),
            vmem_limit_bytes=VMEM_LIMIT,
        ),
    )(q, kv)


# ------------------------------- model glue --------------------------------

def positional_encoding(max_len, embed_size):
    position = jnp.arange(max_len, dtype=jnp.float32)[:, None]
    div_term = jnp.exp(jnp.arange(0, embed_size, 2, dtype=jnp.float32)
                       * (-math.log(10000.0) / embed_size))
    pe = jnp.zeros((max_len, embed_size), jnp.float32)
    pe = pe.at[:, 0::2].set(jnp.sin(position * div_term))
    pe = pe.at[:, 1::2].set(jnp.cos(position * div_term))
    return pe[:, None, :]   # (max_len, 1, E) == pe.unsqueeze(0).transpose(0, 1)


def init_params(key, vocab_size, embed_size, num_heads, hidden_size, num_layers,
                max_len=5000):
    kiter = iter(jax.random.split(key, 512))

    def nrm(shape, scale=0.05):
        return (jax.random.normal(next(kiter), shape, dtype=jnp.float32)
                * scale).astype(ACT_DTYPE)

    def zeros(shape): return jnp.zeros(shape, jnp.float32)
    def ones(shape):  return jnp.ones(shape, jnp.float32)

    E, H = embed_size, hidden_size

    def self_attn():
        return dict(w_qkv=nrm((E, 3 * E)), b_qkv=zeros((3 * E,)),
                    wo=nrm((E, E)), bo=zeros((E,)))

    def cross_attn():
        return dict(wq=nrm((E, E)), bq=zeros((E,)),
                    w_kv=nrm((E, 2 * E)), b_kv=zeros((2 * E,)),
                    wo=nrm((E, E)), bo=zeros((E,)))

    def enc_layer():
        return dict(self_attn=self_attn(),
                    norm1_g=ones((E,)), norm1_b=zeros((E,)),
                    ff_w1=nrm((E, H)), ff_b1=zeros((H,)),
                    ff_w2=nrm((H, E)), ff_b2=zeros((E,)),
                    norm2_g=ones((E,)), norm2_b=zeros((E,)))

    def dec_layer():
        return dict(self_attn=self_attn(), cross_attn=cross_attn(),
                    norm1_g=ones((E,)), norm1_b=zeros((E,)),
                    norm2_g=ones((E,)), norm2_b=zeros((E,)),
                    ff_w1=nrm((E, H)), ff_b1=zeros((H,)),
                    ff_w2=nrm((H, E)), ff_b2=zeros((E,)),
                    norm3_g=ones((E,)), norm3_b=zeros((E,)))

    return dict(
        embedding=(jax.random.normal(next(kiter), (vocab_size, E),
                                     dtype=jnp.float32)).astype(ACT_DTYPE),
        pe=positional_encoding(max_len, E),
        encoder_layers=[enc_layer() for _ in range(num_layers)],
        decoder_layers=[dec_layer() for _ in range(num_layers)],
        enc_norm_g=ones((E,)), enc_norm_b=zeros((E,)),
        dec_norm_g=ones((E,)), dec_norm_b=zeros((E,)),
        fc_w=nrm((E, vocab_size)), fc_b=zeros((vocab_size,)),
    )


def transformer_forward(params, src_tok, tgt_tok, *, num_heads):
    B, Ls = src_tok.shape
    Lt = tgt_tok.shape[1]
    E = params["embedding"].shape[1]
    dh = E // num_heads
    scale = 1.0 / math.sqrt(dh)

    # get_key_padding_mask: additive float mask, -inf (finite NEG_INF) where id == 0
    src_kpm = jnp.where(src_tok == 0, NEG_INF, 0.0).astype(jnp.float32).reshape(B, 1, Ls)
    tgt_kpm = jnp.where(tgt_tok == 0, NEG_INF, 0.0).astype(jnp.float32).reshape(B, 1, Lt)
    # causal (generate_square_subsequent_mask) component is built in-kernel.

    # embedding (glue gather) + positional encoding; reproduces the original
    # `x + pe[:x.size(0), :]` slicing (pe indexed by batch, broadcast over seq,
    # exactly as the batch_first PyTorch model does).
    pe = params["pe"]
    src = (jnp.take(params["embedding"], src_tok, axis=0).astype(jnp.float32)
           + pe[:B]).astype(ACT_DTYPE)                                       # (B, Ls, E)
    tgt = (jnp.take(params["embedding"], tgt_tok, axis=0).astype(jnp.float32)
           + pe[:B]).astype(ACT_DTYPE)                                       # (B, Lt, E)

    n_enc = len(params["encoder_layers"])
    n_dec = len(params["decoder_layers"])

    # --- encoder stack (post-norm, ReLU FFN, dropout = identity in eval) ---
    x2d = src.reshape(B * Ls, E)
    for li, lp in enumerate(params["encoder_layers"]):
        last = (li == n_enc - 1)
        sa = lp["self_attn"]
        qkv = dense(x2d, sa["w_qkv"], sa["b_qkv"]).reshape(B, Ls, 3 * E)     # fused slab
        a = attention_self(qkv, src_kpm, num_heads, scale,
                           causal=False).reshape(B * Ls, E)
        # out-projection + residual + LayerNorm fused
        x2d = dense_residual_layernorm(a, sa["wo"], sa["bo"], x2d,
                                       lp["norm1_g"], lp["norm1_b"])
        # FFN: relu fused in dense; second matmul + residual + LN fused,
        # final encoder norm fused into the last layer's epilogue
        h = dense(x2d, lp["ff_w1"], lp["ff_b1"], activation="relu")
        x2d = dense_residual_layernorm(
            h, lp["ff_w2"], lp["ff_b2"], x2d, lp["norm2_g"], lp["norm2_b"],
            gamma2=params["enc_norm_g"] if last else None,
            beta2=params["enc_norm_b"] if last else None)
    mem2d = x2d                                                              # (B*Ls, E)

    # --- decoder stack ---
    y2d = tgt.reshape(B * Lt, E)
    for li, lp in enumerate(params["decoder_layers"]):
        last = (li == n_dec - 1)
        sa = lp["self_attn"]
        qkv = dense(y2d, sa["w_qkv"], sa["b_qkv"]).reshape(B, Lt, 3 * E)
        a = attention_self(qkv, tgt_kpm, num_heads, scale,
                           causal=True).reshape(B * Lt, E)
        y2d = dense_residual_layernorm(a, sa["wo"], sa["bo"], y2d,
                                       lp["norm1_g"], lp["norm1_b"])

        ca = lp["cross_attn"]
        q = dense(y2d, ca["wq"], ca["bq"]).reshape(B, Lt, E)
        kv = dense(mem2d, ca["w_kv"], ca["b_kv"]).reshape(B, Ls, 2 * E)      # fused K|V
        a = attention_cross(q, kv, num_heads, scale).reshape(B * Lt, E)      # no mask
        y2d = dense_residual_layernorm(a, ca["wo"], ca["bo"], y2d,
                                       lp["norm2_g"], lp["norm2_b"])

        h = dense(y2d, lp["ff_w1"], lp["ff_b1"], activation="relu")
        y2d = dense_residual_layernorm(
            h, lp["ff_w2"], lp["ff_b2"], y2d, lp["norm3_g"], lp["norm3_b"],
            gamma2=params["dec_norm_g"] if last else None,
            beta2=params["dec_norm_b"] if last else None)

    # final projection to vocab (f32 logits)
    logits = dense(y2d, params["fc_w"], params["fc_b"], out_dtype=jnp.float32)
    return logits.reshape(B, Lt, -1)


# ---------------------------------- main ------------------------------------

if __name__ == "__main__":
    vocab_size, embed_size, num_heads, hidden_size, num_layers = 16, 32, 4, 64, 2
    B, Ls, Lt = 2, 8, 8

    key = jax.random.PRNGKey(0)
    pkey, skey, tkey = jax.random.split(key, 3)
    params = init_params(pkey, vocab_size, embed_size, num_heads, hidden_size, num_layers)

    src = jax.random.randint(skey, (B, Ls), 1, vocab_size, dtype=jnp.int32)
    tgt = jax.random.randint(tkey, (B, Lt), 1, vocab_size, dtype=jnp.int32)
    # introduce some padding (token id 0) to exercise the key_padding_masks
    src = src.at[1, -1].set(0)
    tgt = tgt.at[1, -1].set(0)

    out = transformer_forward(params, src, tgt, num_heads=num_heads)
    out = jax.block_until_ready(out)

    assert out.shape == (B, Lt, vocab_size), out.shape
    assert bool(jnp.all(jnp.isfinite(out)))
    print("KERNEL_OK")
</pallas_src>

<mosaic_0001>
module attributes {stable_mosaic.version = 11 : i64} {
  func.func @_dense_kernel(%arg0: i32, %arg1: i32, %arg2: i32, %arg3: memref<16x32xbf16, #tpu.memory_space<vmem>>, %arg4: memref<32x96xbf16, #tpu.memory_space<vmem>>, %arg5: memref<1x96xf32, #tpu.memory_space<vmem>>, %arg6: memref<16x96xbf16, #tpu.memory_space<vmem>>, %arg7: memref<16x96xf32, #tpu.memory_space<vmem>>) attributes {dimension_semantics = [#tpu.dimension_semantics<parallel>, #tpu.dimension_semantics<parallel>, #tpu.dimension_semantics<arbitrary>], iteration_bounds = array<i64: 1, 1, 1>, scalar_prefetch = 0 : i64, scratch_operands = 1 : i64, tpu.core_type = #tpu.core_type<tc>, window_params = [{transform_indices = @transform_0, window_bounds = array<i64: 16, 32>}, {transform_indices = @transform_1, window_bounds = array<i64: 32, 96>}, {transform_indices = @transform_2, window_bounds = array<i64: 1, 96>}, {transform_indices = @transform_3, window_bounds = array<i64: 16, 96>}]} {
    %c0_i32 = arith.constant 0 : i32
    %0 = arith.cmpi eq, %arg2, %c0_i32 : i32
    %1 = arith.extui %0 : i1 to i32
    %c0_i32_0 = arith.constant 0 : i32
    %2 = arith.cmpi ne, %1, %c0_i32_0 : i32
    scf.if %2 {
      %cst_10 = arith.constant 0.000000e+00 : f32
      %12 = vector.broadcast %cst_10 : f32 to vector<16x96xf32>
      %c0_11 = arith.constant 0 : index
      %c0_12 = arith.constant 0 : index
      %13 = vector.load %arg7[%c0_11, %c0_12] : memref<16x96xf32, #tpu.memory_space<vmem>>, vector<16x96xf32>
      tpu.vector_store %arg7[%c0_11, %c0_12], %12 {strides = array<i32>} : memref<16x96xf32, #tpu.memory_space<vmem>>, vector<16x96xf32>,
    } else {
    }
    %c0 = arith.constant 0 : index
    %c0_1 = arith.constant 0 : index
    %3 = vector.load %arg7[%c0, %c0_1] : memref<16x96xf32, #tpu.memory_space<vmem>>, vector<16x96xf32>
    %c0_2 = arith.constant 0 : index
    %c0_3 = arith.constant 0 : index
    %4 = vector.load %arg3[%c0_2, %c0_3] : memref<16x32xbf16, #tpu.memory_space<vmem>>, vector<16x32xbf16>
    %c0_4 = arith.constant 0 : index
    %c0_5 = arith.constant 0 : index
    %5 = vector.load %arg4[%c0_4, %c0_5] : memref<32x96xbf16, #tpu.memory_space<vmem>>, vector<32x96xbf16>
    %cst = arith.constant dense<0.000000e+00> : vector<16x96xf32>
    %6 = tpu.matmul %4, %5, %cst {dimension_numbers = #tpu.dot_dimension_numbers<[1], [0], [0], [1], [0, 0, 1, 1], [], []>} : vector<16x32xbf16>, vector<32x96xbf16>, vector<16x96xf32> -> vector<16x96xf32>
    %7 = arith.addf %3, %6 : vector<16x96xf32>
    %c0_6 = arith.constant 0 : index
    %c0_7 = arith.constant 0 : index
    %8 = vector.load %arg7[%c0_6, %c0_7] : memref<16x96xf32, #tpu.memory_space<vmem>>, vector<16x96xf32>
    tpu.vector_store %arg7[%c0_6, %c0_7], %7 {strides = array<i32>} : memref<16x96xf32, #tpu.memory_space<vmem>>, vector<16x96xf32>,
    %c0_i32_8 = arith.constant 0 : i32
    %9 = arith.cmpi eq, %arg2, %c0_i32_8 : i32
    %10 = arith.extui %9 : i1 to i32
    %c0_i32_9 = arith.constant 0 : i32
    %11 = arith.cmpi ne, %10, %c0_i32_9 : i32
    scf.if %11 {
      %c0_10 = arith.constant 0 : index
      %c0_11 = arith.constant 0 : index
      %12 = vector.load %arg7[%c0_10, %c0_11] : memref<16x96xf32, #tpu.memory_space<vmem>>, vector<16x96xf32>
      %c0_12 = arith.constant 0 : index
      %c0_13 = arith.constant 0 : index
      %13 = vector.load %arg5[%c0_12, %c0_13] : memref<1x96xf32, #tpu.memory_space<vmem>>, vector<1x96xf32>
      %14 = vector.broadcast %13 : vector<1x96xf32> to vector<16x96xf32>
      %15 = arith.addf %12, %14 : vector<16x96xf32>
      %16 = arith.truncf %15 : vector<16x96xf32> to vector<16x96xbf16>
      %c0_14 = arith.constant 0 : index
      %c0_15 = arith.constant 0 : index
      %17 = vector.load %arg6[%c0_14, %c0_15] : memref<16x96xbf16, #tpu.memory_space<vmem>>, vector<16x96xbf16>
      tpu.vector_store %arg6[%c0_14, %c0_15], %16 {strides = array<i32>} : memref<16x96xbf16, #tpu.memory_space<vmem>>, vector<16x96xbf16>,
    } else {
    }
    return
  }
  func.func @transform_0(%arg0: i32, %arg1: i32, %arg2: i32) -> (i32, i32) {
    %c0_i32 = arith.constant 0 : i32
    return %arg0, %arg2 : i32, i32
  }
  func.func @transform_1(%arg0: i32, %arg1: i32, %arg2: i32) -> (i32, i32) {
    %c0_i32 = arith.constant 0 : i32
    return %arg2, %arg1 : i32, i32
  }
  func.func @transform_2(%arg0: i32, %arg1: i32, %arg2: i32) -> (i32, i32) {
    %c0_i32 = arith.constant 0 : i32
    %c0_i32_0 = arith.constant 0 : i32
    return %c0_i32, %arg1 : i32, i32
  }
  func.func @transform_3(%arg0: i32, %arg1: i32, %arg2: i32) -> (i32, i32) {
    %c0_i32 = arith.constant 0 : i32
    return %arg0, %arg1 : i32, i32
  }
}

</mosaic_0001>

<bundles_post_ra>
// kernel: tpu_custom_call.1
= control target key start
LH: loop header
LB: loop body
LE: loop exit
PB: predicated region body
PF: predicated region fallthrough
CT: control target
= control target key end

     0   :  { %8 = vsyncpa [#allocation4], 0  ;;  %s350_s0 = inlined_call_operand.hbm [shape: bf16[16,32], index: 0, kind: input, shape index: {}]   ;;  %s351_s1 = inlined_call_operand.hbm [shape: bf16[32,96], index: 1, kind: input, shape index: {}]   ;;  %s352_s2 = inlined_call_operand.vmem [shape: f32[1,96], index: 2, kind: input, shape index: {}]   ;;  %s353_s3 = inlined_call_operand.hbm [shape: bf16[16,96], index: 3, kind: output, shape index: {}]  }
   0x1   :  { %9 = vsyncpa [#allocation7], 0 }
   0x2   :  { %10 = vsyncpa [#allocation5], 0  ;;  %s271_s12 = smov [#allocation3]   ;;  %s199_s16 = scalar_lea.hbm %s350_s0, 128 }
   0x3   :  { %s16_s13 = sshll.u32 %s271_s12, 4  ;;  %p200_p0 = scmp.ne.s32.totalorder %s350_s0, %s199_s16  ;;  %s17_s13 = int_to_ptr.vmem [resolvable:$true] %s16_s13 }
   0x4   :  { %p203_p1 = scmp.lt.u32.totalorder %s199_s16, %s350_s0 }
   0x6   :  { %p205_p2 = pnand %p203_p1, %p200_p0 }
   0x8   :  { %208 = shalt.err (!%p205_p2)
}
   0x9   :  { %s209_s21 = scalar_lea.vmem %s17_s13, 128  ;;  %p214_p4 = scmp.lt.s32.totalorder %s17_s13, %s17_s13 }
   0xa   :  { %p210_p3 = scmp.ne.s32.totalorder %s17_s13, %s209_s21  ;;  %p215_p5 = scmp.lt.s32.totalorder %s209_s21, %s209_s21 }
   0xc   :  { %p216_p6 = por %p215_p5, %p214_p4 }
   0xe   :  { %p217_p7 = pnand %p216_p6, %p210_p3 }
  0x10   :  { %220 = shalt.err (!%p217_p7)
}
  0x11   :  { %s272_s22 = smov 64   ;;  %s273_s23 = smov 4  }
  0x12   :  { %22 = dma.hbm_to_vmem [thread:$0]  %s350_s0, 128, %s17_s13, [#allocation4], %s272_s22, %s272_s22, %s273_s23  }
  0x13   :  { %s274_s26 = smov [#allocation6]   ;;  %s221_s30 = scalar_lea.hbm %s351_s1, 256 }
  0x14   :  { %s28_s27 = sshll.u32 %s274_s26, 4  ;;  %p222_p8 = scmp.ne.s32.totalorder %s351_s1, %s221_s30  ;;  %s29_s27 = int_to_ptr.vmem [resolvable:$true] %s28_s27 }
  0x15   :  { %p225_p9 = scmp.lt.u32.totalorder %s221_s30, %s351_s1 }
  0x17   :  { %p227_p10 = pnand %p225_p9, %p222_p8 }
  0x19   :  { %230 = shalt.err (!%p227_p10)
}
  0x1a   :  { %s231_s8 = scalar_lea.vmem %s29_s27, 256  ;;  %p236_p12 = scmp.lt.s32.totalorder %s29_s27, %s29_s27 }
  0x1b   :  { %p232_p11 = scmp.ne.s32.totalorder %s29_s27, %s231_s8  ;;  %p237_p13 = scmp.lt.s32.totalorder %s231_s8, %s231_s8 }
  0x1d   :  { %p238_p0 = por %p237_p13, %p236_p12 }
  0x1f   :  { %p239_p1 = pnand %p238_p0, %p232_p11 }
  0x21   :  { %242 = shalt.err (!%p239_p1)
}
  0x22   :  { %34 = dma.hbm_to_vmem [thread:$0]  %s351_s1, 256, %s29_s27, [#allocation7], %s272_s22, %s272_s22, %s273_s23  }
  0x23   :  { %265 = dma.done.wait [#allocation4], 128  }
  0x24   :  { %266 = vsyncadd [#allocation4], 4294967168 }
  0x25   :  { %267 = dma.done.wait [#allocation7], 256  }
  0x26   :  { %268 = vsyncadd [#allocation7], 4294967040  ;;  %vm48_vm0 = vcmask 785408   ;;  %v275_v0 = vmov 0.0   ;;  %vm276_vm1 = vmmov 0   ;;  %v196_v1 = vld [vmem:[#allocation6] sm:$0xff]  }
  0x27   :  { %49 = vst.msk [vmem:[#allocation2] sm:$0xff] %vm48_vm0, %v275_v0  ;;  %50 = vst.msk [vmem:[#allocation2 + $0x8] sm:$0xff] %vm48_vm0, %v275_v0  ;;  %181 = vmatprep.subr.bf16.mxu0 %v275_v0  ;;  %185 = vmatprep.mubr.msk.bf16.mxu0 %vm276_vm1, %v275_v0  ;;  %v197_v2 = vld [vmem:[#allocation6 + $0x8] sm:$0xff]   ;;  %v198_v3 = vld [vmem:[#allocation3] sm:$0xff]   ;;  %vm76_vm2 = vcmask 261120   ;;  %vm148_vm3 = vcmask 781312  }
  0x28   :  { %182 = vmatpush3.bf16.msra.mxu0 %v196_v1  ;;  %v173_v12 = vld [vmem:[%s352_s2] ss:$0 sm:$0xff]  ;;  %s277_s11 = smov [#allocation8]  }
  0x29   :  { %183 = vmatprep.subr.bf16.mxu0 %v275_v0  ;;  %s156_s12 = sshll.u32 %s277_s11, 4  ;;  %s157_s12 = int_to_ptr.vmem [resolvable:$true] %s156_s12 }
  0x2a   :  { %s243_s13 = scalar_lea.vmem %s157_s12, 128  ;;  %p248_p3 = scmp.lt.s32.totalorder %s157_s12, %s157_s12 }
  0x2b   :  { %p244_p2 = scmp.ne.s32.totalorder %s157_s12, %s243_s13  ;;  %p249_p4 = scmp.lt.s32.totalorder %s243_s13, %s243_s13 }
  0x2c   :  { %184 = vmatpush3.bf16.msra.mxu0 %v197_v2 }
  0x2d   :  { %p250_p5 = por %p249_p4, %p248_p3 }
  0x2e   :  { %v51_v4 = vld [vmem:[#allocation2] sm:$0xff]  ;;  %v52_v6 = vld [vmem:[#allocation2 + $0x8] sm:$0xff] }
  0x2f   :  { %186 = vmatmul.mubr.msk.bf16.vlgmr.msra.gmra.mrb[0].mxu0 %vm76_vm2, %v198_v3  ;;  %p251_p6 = pnand %p250_p5, %p244_p2 }
 0x102   :  { %v114_v5 = vpop.f32.mrb[0].mxu0 }
 0x103   :  { %v121_v7 = vadd.f32 %v114_v5, %v51_v4  ;;  %v187_v8 = vpop.f32.mrb[1].mxu0 }
 0x104   :  { %v117_v9 = vpop.f32.mrb[2].mxu0 }
 0x105   :  { %124 = vst.msk [vmem:[#allocation2] sm:$0xff] %vm48_vm0, %v121_v7  ;;  %v122_v10 = vadd.f32 %v117_v9, %v52_v6  ;;  %v188_v11 = vpop.f32.mrb[3].mxu0 }
 0x107   :  { %125 = vst.msk [vmem:[#allocation2 + $0x8] sm:$0xff] %vm48_vm0, %v122_v10 }
 0x10c   :  { %v129_v13 = vld [vmem:[#allocation2] sm:$0xff] }
 0x10d   :  { %v138_v14 = vadd.f32 %v173_v12, %v129_v13 }
 0x10e   :  { %v130_v15 = vld [vmem:[#allocation2 + $0x8] sm:$0xff] }
 0x10f   :  { %v139_v16 = vadd.f32 %v173_v12, %v130_v15  ;;  %v176_v17 = vpack.c.bf16 %v138_v14, %v138_v14 }
 0x111   :  { %v177_v18 = vpack.c.bf16 %v139_v16, %v139_v16  ;;  %149 = vst.msk [vmem:[#allocation8] sm:$0xf] %vm148_vm3, %v176_v17 }
 0x113   :  { %150 = vst.msk [vmem:[#allocation8 + $0x4] sm:$0xf] %vm148_vm3, %v177_v18 }
 0x114   :  { %254 = shalt.err (!%p251_p6)
}
 0x115   :  { %s255_s15 = scalar_lea.hbm %s353_s3, 128 }
 0x116   :  { %p256_p7 = scmp.ne.s32.totalorder %s353_s3, %s255_s15  ;;  %p259_p8 = scmp.lt.u32.totalorder %s255_s15, %s353_s3 }
 0x118   :  { %p261_p9 = pnand %p259_p8, %p256_p7 }
 0x11a   :  { %264 = shalt.err (!%p261_p9)
}
 0x11b   :  { %162 = dma.vmem_to_hbm [thread:$0]  %s157_s12, 128, %s353_s3, [#allocation5], %s272_s22, %s272_s22, %s273_s23  }
 0x11c   :  { %269 = dma.done.wait [#allocation5], 128  }
 0x11d   :  { %270 = vsyncadd [#allocation5], 4294967168 }
 0x11e   :  { %166 = vsyncpa [#allocation4], 1 }
 0x11f   :  { %167 = vsyncpa [#allocation7], 1 }
 0x120   :  { %168 = vsyncpa [#allocation5], 1 }

</bundles_post_ra>
